<compile_context>
chip_gen: v7x
topology: tpu7x:2x2x1
jax: 0.10.0
libtpu: 0.0.40
codegen_flags: <defaults>
</compile_context>

<pallas_src>
import jax
import jax.numpy as jnp
from jax.experimental import pallas as pl
from jax.experimental.pallas import tpu as pltpu


def _policy_net_kernel(x_ref, w1_ref, w2_ref, w3_ref, b1_ref, b2_ref, b3_ref, o_ref):
    """Batch-on-lanes tile: x^T (I,TB) -> W1@ -> relu -> W2@ -> relu -> W3@ -> softmax.

    Weights are in PyTorch (out, in) layout; activations are (features, TB) so the
    batch dimension sits on the 128-lane axis and the final (O, TB) store is lane-dense.
    """
    xT = x_ref[...]                                                        # (I, TB)

    # fc1 + ReLU: (H, I) @ (I, TB) -> (H, TB)
    h1 = jnp.dot(w1_ref[...], xT, preferred_element_type=jnp.float32) + b1_ref[...]
    h1 = jnp.maximum(h1, 0.0)

    # fc2 + ReLU: (H, H) @ (H, TB) -> (H, TB)
    h2 = jnp.dot(w2_ref[...], h1, preferred_element_type=jnp.float32) + b2_ref[...]
    h2 = jnp.maximum(h2, 0.0)

    # fc3: (O, H) @ (H, TB) -> (O, TB)
    logits = jnp.dot(w3_ref[...], h2, preferred_element_type=jnp.float32) + b3_ref[...]

    # Softmax over the class axis (axis 0, sublanes).  Exact normalization.
    m = jnp.max(logits, axis=0, keepdims=True)
    e = jnp.exp(logits - m)
    s = jnp.sum(e, axis=0, keepdims=True)
    o_ref[...] = (e / s).astype(o_ref.dtype)


def prepare_params(torch_params):
    """One-time conversion to kernel layout.

    Weights stay in PyTorch (out, in) layout (no transpose needed for the
    batch-on-lanes kernel); biases become (out, 1) columns that broadcast
    along the lane (batch) axis.
    """
    f32 = jnp.float32
    return {
        "w1": torch_params["fc1_w"].astype(f32),          # (H, I)
        "w2": torch_params["fc2_w"].astype(f32),          # (H, H)
        "w3": torch_params["fc3_w"].astype(f32),          # (O, H)
        "b1": torch_params["fc1_b"].astype(f32)[:, None],  # (H, 1)
        "b2": torch_params["fc2_b"].astype(f32)[:, None],  # (H, 1)
        "b3": torch_params["fc3_b"].astype(f32)[:, None],  # (O, 1)
    }


def _round_up(x, m):
    return ((x + m - 1) // m) * m


def policy_net_forward(x, kp, *, block_b=512):
    """x: [B, input_size] float32. kp: output of prepare_params. Returns [B, output_size]."""
    B, in_size = x.shape
    H = kp["w1"].shape[0]
    O = kp["w3"].shape[0]

    # Batch tile on the lane axis.  For small batches use one full-batch step; for
    # larger batches use a multiple-of-128 tile and keep >= 2 grid steps so both
    # v7x TensorCores get work ("parallel" axis), capped at block_b.
    if B <= 128:
        tb = B
    else:
        half = _round_up(pl.cdiv(B, 2), 128)
        tb = max(128, min(block_b, half))
    grid = (pl.cdiv(B, tb),)

    xT = x.T  # (in_size, B): tiny layout plumbing so batch sits on the lane axis

    outT = pl.pallas_call(
        _policy_net_kernel,
        out_shape=jax.ShapeDtypeStruct((O, B), jnp.float32),
        grid=grid,
        in_specs=[
            pl.BlockSpec((in_size, tb), lambda i: (0, i)),   # x^T tiled over batch (lanes)
            pl.BlockSpec((H, in_size), lambda i: (0, 0)),    # W1: VMEM-resident
            pl.BlockSpec((H, H), lambda i: (0, 0)),          # W2: VMEM-resident
            pl.BlockSpec((O, H), lambda i: (0, 0)),          # W3: VMEM-resident
            pl.BlockSpec((H, 1), lambda i: (0, 0)),          # b1
            pl.BlockSpec((H, 1), lambda i: (0, 0)),          # b2
            pl.BlockSpec((O, 1), lambda i: (0, 0)),          # b3
        ],
        out_specs=pl.BlockSpec((O, tb), lambda i: (0, i)),   # lane-dense output store
        compiler_params=pltpu.CompilerParams(
            dimension_semantics=("parallel",),               # megacore on v7x
        ),
    )(xT, kp["w1"], kp["w2"], kp["w3"], kp["b1"], kp["b2"], kp["b3"])

    return outT.T  # back to (B, O) to match PolicyNet.forward semantics


def init_params(key, input_size, hidden_size, output_size):
    """Deterministic init mimicking nn.Linear default (uniform +/- 1/sqrt(fan_in)).

    Returned in PyTorch layout: weight (out, in), bias (out,).
    """
    ks = jax.random.split(key, 6)

    def lin(kw, kb, fan_in, fan_out):
        bound = 1.0 / jnp.sqrt(fan_in)
        w = jax.random.uniform(kw, (fan_out, fan_in), jnp.float32, -bound, bound)
        b = jax.random.uniform(kb, (fan_out,), jnp.float32, -bound, bound)
        return w, b

    w1, b1 = lin(ks[0], ks[1], input_size, hidden_size)
    w2, b2 = lin(ks[2], ks[3], hidden_size, hidden_size)
    w3, b3 = lin(ks[4], ks[5], hidden_size, output_size)
    return {"fc1_w": w1, "fc1_b": b1,
            "fc2_w": w2, "fc2_b": b2,
            "fc3_w": w3, "fc3_b": b3}


def reference_forward(x, torch_params):
    h1 = jax.nn.relu(x @ torch_params["fc1_w"].T + torch_params["fc1_b"])
    h2 = jax.nn.relu(h1 @ torch_params["fc2_w"].T + torch_params["fc2_b"])
    return jax.nn.softmax(h2 @ torch_params["fc3_w"].T + torch_params["fc3_b"], axis=-1)


if __name__ == "__main__":
    # CartPole-like policy: obs dim 4, hidden 32, 2 actions.
    input_size, hidden_size, output_size = 4, 32, 2

    key = jax.random.PRNGKey(0)
    k_x, k_p = jax.random.split(key)
    params = init_params(k_p, input_size, hidden_size, output_size)
    kp = prepare_params(params)

    # --- Rollout-sized batch (exercises the multi-step parallel batch grid) ---
    B_big = 256
    x_big = jax.random.normal(k_x, (B_big, input_size), jnp.float32)

    out_big = jax.block_until_ready(policy_net_forward(x_big, kp))
    ref_big = reference_forward(x_big, params)
    assert out_big.shape == (B_big, output_size)
    assert jnp.allclose(out_big, ref_big, atol=1e-4, rtol=1e-4), "mismatch vs reference"
    assert jnp.allclose(jnp.sum(out_big, axis=-1), 1.0, atol=1e-5), "rows must sum to 1"

    # --- Tiny batch path (single grid step, full-batch block) ---
    B_small = 8
    x_small = x_big[:B_small]
    out_small = jax.block_until_ready(policy_net_forward(x_small, kp))
    assert out_small.shape == (B_small, output_size)
    assert jnp.allclose(out_small, ref_big[:B_small], atol=1e-4, rtol=1e-4), "small-batch mismatch"
    assert jnp.allclose(jnp.sum(out_small, axis=-1), 1.0, atol=1e-5)

    print("KERNEL_OK")
</pallas_src>

<mosaic_0001>
module attributes {stable_mosaic.version = 11 : i64} {
  func.func @_policy_net_kernel(%arg0: i32, %arg1: memref<4x128xf32, #tpu.memory_space<vmem>>, %arg2: memref<32x4xf32, #tpu.memory_space<vmem>>, %arg3: memref<32x32xf32, #tpu.memory_space<vmem>>, %arg4: memref<2x32xf32, #tpu.memory_space<vmem>>, %arg5: memref<32x1xf32, #tpu.memory_space<vmem>>, %arg6: memref<32x1xf32, #tpu.memory_space<vmem>>, %arg7: memref<2x1xf32, #tpu.memory_space<vmem>>, %arg8: memref<2x128xf32, #tpu.memory_space<vmem>>) attributes {dimension_semantics = [#tpu.dimension_semantics<parallel>], iteration_bounds = array<i64: 2>, scalar_prefetch = 0 : i64, scratch_operands = 0 : i64, tpu.core_type = #tpu.core_type<tc>, window_params = [{transform_indices = @transform_0, window_bounds = array<i64: 4, 128>}, {pipeline_mode = #tpu.pipeline_mode<synchronous>, transform_indices = @transform_1, window_bounds = array<i64: 32, 4>}, {pipeline_mode = #tpu.pipeline_mode<synchronous>, transform_indices = @transform_2, window_bounds = array<i64: 32, 32>}, {pipeline_mode = #tpu.pipeline_mode<synchronous>, transform_indices = @transform_3, window_bounds = array<i64: 2, 32>}, {pipeline_mode = #tpu.pipeline_mode<synchronous>, transform_indices = @transform_4, window_bounds = array<i64: 32, 1>}, {pipeline_mode = #tpu.pipeline_mode<synchronous>, transform_indices = @transform_5, window_bounds = array<i64: 32, 1>}, {pipeline_mode = #tpu.pipeline_mode<synchronous>, transform_indices = @transform_6, window_bounds = array<i64: 2, 1>}, {transform_indices = @transform_7, window_bounds = array<i64: 2, 128>}]} {
    %c0 = arith.constant 0 : index
    %c0_0 = arith.constant 0 : index
    %0 = vector.load %arg1[%c0, %c0_0] : memref<4x128xf32, #tpu.memory_space<vmem>>, vector<4x128xf32>
    %c0_1 = arith.constant 0 : index
    %c0_2 = arith.constant 0 : index
    %1 = vector.load %arg2[%c0_1, %c0_2] : memref<32x4xf32, #tpu.memory_space<vmem>>, vector<32x4xf32>
    %cst = arith.constant dense<0.000000e+00> : vector<32x128xf32>
    %2 = tpu.matmul %1, %0, %cst {dimension_numbers = #tpu.dot_dimension_numbers<[1], [0], [0], [1], [0, 0, 1, 1], [], []>} : vector<32x4xf32>, vector<4x128xf32>, vector<32x128xf32> -> vector<32x128xf32>
    %c0_3 = arith.constant 0 : index
    %c0_4 = arith.constant 0 : index
    %3 = vector.load %arg5[%c0_3, %c0_4] : memref<32x1xf32, #tpu.memory_space<vmem>>, vector<32x1xf32>
    %4 = vector.broadcast %3 : vector<32x1xf32> to vector<32x128xf32>
    %5 = arith.addf %2, %4 : vector<32x128xf32>
    %cst_5 = arith.constant 0.000000e+00 : f32
    %6 = vector.broadcast %cst_5 : f32 to vector<32x128xf32>
    %7 = arith.maximumf %5, %6 : vector<32x128xf32>
    %c0_6 = arith.constant 0 : index
    %c0_7 = arith.constant 0 : index
    %8 = vector.load %arg3[%c0_6, %c0_7] : memref<32x32xf32, #tpu.memory_space<vmem>>, vector<32x32xf32>
    %cst_8 = arith.constant dense<0.000000e+00> : vector<32x128xf32>
    %9 = tpu.matmul %8, %7, %cst_8 {dimension_numbers = #tpu.dot_dimension_numbers<[1], [0], [0], [1], [0, 0, 1, 1], [], []>} : vector<32x32xf32>, vector<32x128xf32>, vector<32x128xf32> -> vector<32x128xf32>
    %c0_9 = arith.constant 0 : index
    %c0_10 = arith.constant 0 : index
    %10 = vector.load %arg6[%c0_9, %c0_10] : memref<32x1xf32, #tpu.memory_space<vmem>>, vector<32x1xf32>
    %11 = vector.broadcast %10 : vector<32x1xf32> to vector<32x128xf32>
    %12 = arith.addf %9, %11 : vector<32x128xf32>
    %cst_11 = arith.constant 0.000000e+00 : f32
    %13 = vector.broadcast %cst_11 : f32 to vector<32x128xf32>
    %14 = arith.maximumf %12, %13 : vector<32x128xf32>
    %c0_12 = arith.constant 0 : index
    %c0_13 = arith.constant 0 : index
    %15 = vector.load %arg4[%c0_12, %c0_13] : memref<2x32xf32, #tpu.memory_space<vmem>>, vector<2x32xf32>
    %cst_14 = arith.constant dense<0.000000e+00> : vector<2x128xf32>
    %16 = tpu.matmul %15, %14, %cst_14 {dimension_numbers = #tpu.dot_dimension_numbers<[1], [0], [0], [1], [0, 0, 1, 1], [], []>} : vector<2x32xf32>, vector<32x128xf32>, vector<2x128xf32> -> vector<2x128xf32>
    %c0_15 = arith.constant 0 : index
    %c0_16 = arith.constant 0 : index
    %17 = vector.load %arg7[%c0_15, %c0_16] : memref<2x1xf32, #tpu.memory_space<vmem>>, vector<2x1xf32>
    %18 = vector.broadcast %17 : vector<2x1xf32> to vector<2x128xf32>
    %19 = arith.addf %16, %18 : vector<2x128xf32>
    %cst_17 = arith.constant dense<0xFF800000> : vector<128xf32>
    %20 = vector.multi_reduction <maximumf>, %19, %cst_17 [0] : vector<2x128xf32> to vector<128xf32>
    %21 = vector.shape_cast %20 : vector<128xf32> to vector<1x128xf32>
    %22 = vector.broadcast %21 : vector<1x128xf32> to vector<2x128xf32>
    %23 = arith.subf %19, %22 : vector<2x128xf32>
    %24 = math.exp %23 : vector<2x128xf32>
    %cst_18 = arith.constant dense<0.000000e+00> : vector<128xf32>
    %25 = vector.multi_reduction <add>, %24, %cst_18 [0] : vector<2x128xf32> to vector<128xf32>
    %26 = vector.shape_cast %25 : vector<128xf32> to vector<1x128xf32>
    %27 = vector.broadcast %26 : vector<1x128xf32> to vector<2x128xf32>
    %28 = arith.divf %24, %27 : vector<2x128xf32>
    %c0_19 = arith.constant 0 : index
    %c0_20 = arith.constant 0 : index
    %29 = vector.load %arg8[%c0_19, %c0_20] : memref<2x128xf32, #tpu.memory_space<vmem>>, vector<2x128xf32>
    tpu.vector_store %arg8[%c0_19, %c0_20], %28 {strides = array<i32>} : memref<2x128xf32, #tpu.memory_space<vmem>>, vector<2x128xf32>,
    return
  }
  func.func @transform_0(%arg0: i32) -> (i32, i32) {
    %c0_i32 = arith.constant 0 : i32
    %c0_i32_0 = arith.constant 0 : i32
    return %c0_i32, %arg0 : i32, i32
  }
  func.func @transform_1(%arg0: i32) -> (i32, i32) {
    %c0_i32 = arith.constant 0 : i32
    %c0_i32_0 = arith.constant 0 : i32
    %c0_i32_1 = arith.constant 0 : i32
    return %c0_i32, %c0_i32_0 : i32, i32
  }
  func.func @transform_2(%arg0: i32) -> (i32, i32) {
    %c0_i32 = arith.constant 0 : i32
    %c0_i32_0 = arith.constant 0 : i32
    %c0_i32_1 = arith.constant 0 : i32
    return %c0_i32, %c0_i32_0 : i32, i32
  }
  func.func @transform_3(%arg0: i32) -> (i32, i32) {
    %c0_i32 = arith.constant 0 : i32
    %c0_i32_0 = arith.constant 0 : i32
    %c0_i32_1 = arith.constant 0 : i32
    return %c0_i32, %c0_i32_0 : i32, i32
  }
  func.func @transform_4(%arg0: i32) -> (i32, i32) {
    %c0_i32 = arith.constant 0 : i32
    %c0_i32_0 = arith.constant 0 : i32
    %c0_i32_1 = arith.constant 0 : i32
    return %c0_i32, %c0_i32_0 : i32, i32
  }
  func.func @transform_5(%arg0: i32) -> (i32, i32) {
    %c0_i32 = arith.constant 0 : i32
    %c0_i32_0 = arith.constant 0 : i32
    %c0_i32_1 = arith.constant 0 : i32
    return %c0_i32, %c0_i32_0 : i32, i32
  }
  func.func @transform_6(%arg0: i32) -> (i32, i32) {
    %c0_i32 = arith.constant 0 : i32
    %c0_i32_0 = arith.constant 0 : i32
    %c0_i32_1 = arith.constant 0 : i32
    return %c0_i32, %c0_i32_0 : i32, i32
  }
  func.func @transform_7(%arg0: i32) -> (i32, i32) {
    %c0_i32 = arith.constant 0 : i32
    %c0_i32_0 = arith.constant 0 : i32
    return %c0_i32, %arg0 : i32, i32
  }
}

</mosaic_0001>

<bundles_post_ra>
// kernel: tpu_custom_call.1
= control target key start
LH: loop header
LB: loop body
LE: loop exit
PB: predicated region body
PF: predicated region fallthrough
CT: control target
= control target key end

     0   :  { %12 = vsyncpa [#allocation3], 0  ;;  %s1119_s0 = inlined_call_operand.vmem [shape: f32[4,256], index: 0, kind: input, shape index: {}]   ;;  %s1120_s1 = inlined_call_operand.vmem [shape: f32[32,4], index: 1, kind: input, shape index: {}]   ;;  %s1121_s2 = inlined_call_operand.vmem [shape: f32[32,32], index: 2, kind: input, shape index: {}]   ;;  %s1122_s3 = inlined_call_operand.vmem [shape: f32[2,32], index: 3, kind: input, shape index: {}]   ;;  %s1123_s4 = inlined_call_operand.vmem [shape: f32[32,1], index: 4, kind: input, shape index: {}]   ;;  %s1124_s5 = inlined_call_operand.vmem [shape: f32[32,1], index: 5, kind: input, shape index: {}]   ;;  %s1125_s6 = inlined_call_operand.vmem [shape: f32[2,1], index: 6, kind: input, shape index: {}]   ;;  %s1126_s7 = inlined_call_operand.hbm [shape: f32[2,256], index: 7, kind: output, shape index: {}]  }
   0x1   :  { %14 = vsyncpa [#allocation3 + $0x1], 0  ;;  %s956_s24 = smov 0   ;;  %s958_s25 = smov 0  }
   0x2   :  { %s960_s26 = smov 0   ;;  %s962_s27 = smov 0  }
   0x3 LB: > { %s977_s28 = sadd.s32 4294967295, %s909_s27   ;;  %s713_s29 = sadd.s32 4294967294, %s909_s27   ;;  %s909_s27 = sphi %s962_s27, %s1132_s27   ;;  %s905_s26 = sphi %s960_s26, %s1131_s26   ;;  %s901_s25 = sphi %s958_s25, %s1130_s25   ;;  %s897_s24 = sphi %s956_s24, %s1129_s24  }
   0x4   : > { %s981_s30 = sadd.s32 1, %s909_s27   ;;  %s179_s8 = sadd.s32 1, %s905_s26 }
   0x5   : > { %s176_s9 = ssub.s32 %s909_s27, %s981_s30  ;;  %p189_p0 = scmp.ne.s32.totalorder %s905_s26, %s901_s25 }
   0x6   : > { %p177_p1 = scmp.eq.s32.totalorder %s176_s9, 0  ;;  %p190_p2 = scmp.eq.s32.totalorder %s977_s28, 1 }
   0x7   : > { %p195_p3 = scmp.ne.s32.totalorder %s901_s25, %s897_s24  ;;  %p196_p4 = scmp.eq.s32.totalorder %s713_s29, 1 }
   0x8   : > { %s992_s10 = scalar_select %p177_p1, %s905_s26, %s179_s8  }
   0x9   : > { %p994_p5 = por %p190_p2, %p189_p0  ;;  %p998_p6 = por %p196_p4, %p195_p3 }
   0xa   : > { %p716_p7 = scmp.ge.s32.totalorder %s909_s27, 1  ;;  %p239_p8 = scmp.lt.s32.totalorder %s909_s27, 3 }
   0xc   : > { %p240_p9 = pnand %p716_p7, %p239_p8 }
   0xd   : > { %p270_p10 = scmp.lt.s32.totalorder (!%p240_p9), %s977_s28, 1  ;;  %v275_v0 = vld [vmem:[%s1120_s1] sm:$0xff] (!%p240_p9)  ;;  %vm303_vm0 = vcmask (!%p240_p9), 31744   ;;  %v911_v2 = vmov (!%p240_p9), 0   ;;  %v281_v3 = vld [vmem:[%s1123_s4 + $0x10] sm:$0xff] (!%p240_p9)  ;;  %vm316_vm1 = vcmask (!%p240_p9), 1043456  }
   0xe   : > { %243 = sbr.rel (%p240_p9) target bundleno = 763 (0x2fb), region = 48  ;;  %753 = vmatprep.mubr.msk.f32.mxu0 (!%p240_p9), %vm303_vm0, %v275_v0  ;;  %v279_v1 = vld [vmem:[%s1123_s4] sm:$0xff] (!%p240_p9)  ;;  %841 = vset.pattern.permute.xlu0 (!%p240_p9), %v911_v2  ;;  %v280_v4 = vld [vmem:[%s1123_s4 + $0x8] sm:$0xff] (!%p240_p9)  ;;  %v282_v5 = vld [vmem:[%s1123_s4 + $0x18] sm:$0xff] (!%p240_p9)  ;;  %vm437_vm2 = vcmask (!%p240_p9), 261120   ;;  %v912_v37 = vmov (!%p240_p9), 0.0|0.0  }
   0xf   : > { %842 = vset.pattern.permute.xlu1 (!%p240_p9), %v911_v2  ;;  %285 = vperm.xlu0 (!%p240_p9), %841, %v279_v1   ;;  %v276_v7 = vld [vmem:[%s1120_s1 + $0x8] sm:$0xff] (!%p240_p9)  ;;  %v277_v8 = vld [vmem:[%s1120_s1 + $0x10] sm:$0xff] (!%p240_p9)  ;;  %v413_v9 = vld [vmem:[%s1124_s5] sm:$0xff] (!%p240_p9)  ;;  %vm913_vm3 = vmmov (!%p240_p9), 0   ;;  %v914_v38 = vmov (!%p240_p9), 0.0   ;;  %vm619_vm4 = vcmask (!%p240_p9), 1041408  }
  0x10   : > { %295 = vperm.xlu1 (!%p240_p9), %842, %v281_v3   ;;  %v414_v10 = vld [vmem:[%s1124_s5 + $0x8] sm:$0xff] (!%p240_p9)  ;;  %v278_v11 = vld [vmem:[%s1120_s1 + $0x18] sm:$0xff] (!%p240_p9)  ;;  %v415_v12 = vld [vmem:[%s1124_s5 + $0x10] sm:$0xff] (!%p240_p9)  ;;  %s267_s9 = sand.u32 (!%p240_p9), 1, %s901_s25   ;;  %s730_s14 = sshll.u32 (!%p240_p9), %s977_s28, 5 }
  0x11   : > { %v416_v13 = vld [vmem:[%s1124_s5 + $0x18] sm:$0xff] (!%p240_p9)  ;;  %v540_v14 = vld [vmem:[%s1125_s6] sm:$0x3] (!%p240_p9)  ;;  %v410_v34 = vld [vmem:[%s1121_s2 + $0x8] sm:$0xff] (!%p240_p9)  ;;  %s717_s13 = sshll.u32 (!%p240_p9), %s267_s9, 1  ;;  %s1077_s19 = scalar_lea.hbm (!%p240_p9), %s1126_s7, %s730_s14 }
  0x12   : > { %v409_v15 = vld [vmem:[%s1121_s2] sm:$0xff] (!%p240_p9)  ;;  %v411_v35 = vld [vmem:[%s1121_s2 + $0x10] sm:$0xff] (!%p240_p9)  ;;  %v412_v36 = vld [vmem:[%s1121_s2 + $0x18] sm:$0xff] (!%p240_p9)  ;;  %s269_s15 = scalar_lea.vmem (!%p240_p9), [#allocation2], %s717_s13 }
  0x13   : > { %290 = vperm.xlu0 (!%p240_p9), %841, %v280_v4   ;;  %767 = vmatprep.mubr.msk.f32.mxu1 (!%p240_p9), %vm437_vm2, %v409_v15  ;;  %v539_v57 = vld [vmem:[%s1122_s3] sm:$0x3] (!%p240_p9)  ;;  %s654_s16 = sshll.u32 (!%p240_p9), %s269_s15, 4  ;;  %s1079_s16 = int_to_ptr.vmem [resolvable:$true] %s654_s16 }
  0x14   : > { %300 = vperm.xlu1 (!%p240_p9), %842, %v282_v5   ;;  %s847_s21 = scalar_lea.vmem (!%p240_p9), %s1079_s16, 32 }
  0x15   : > { %s271_s17 = scalar_select %p270_p10, %s977_s28, 1 }
  0x16   : > { %p848_p11 = scmp.ne.s32.totalorder %s1079_s16, %s847_s21  ;;  %s915_s28 = smov [#allocation2]  }
  0x17   : > { %s718_s20 = sshll.u32 %s271_s17, 2  ;;  %419 = vperm.xlu0 %841, %v413_v9   ;;  %s851_s22 = sshll.u32 %s915_s28, 4  ;;  %s852_s22 = int_to_ptr.vmem [resolvable:$false] %s851_s22 }
  0x18   : > { %s273_s8 = scalar_lea.vmem %s1119_s0, %s718_s20  ;;  %424 = vperm.xlu1 %842, %v414_v10   ;;  %s641_s20 = scalar_lea.sflag [#allocation3], %s267_s9 }
  0x19   : > { %v274_v6 = vld [vmem:[%s273_s8] sm:$0xf]  ;;  %p849_p12 = pnand %p848_p11, %p994_p5  ;;  %s853_s23 = scalar_lea.vmem %s852_s22, 64 }
  0x1a   : > { %751 = vmatprep.subr.msk.mxu0 %vm316_vm1, %v274_v6  ;;  %p854_p0 = scmp.lt.s32.totalorder %s1079_s16, %s852_s22  ;;  %p855_p1 = scmp.lt.s32.totalorder %s853_s23, %s847_s21 }
  0x1b   : > { %752 = vmatpush3.msk.msra.mxu0 %vm316_vm1, %v274_v6  ;;  %429 = vperm.xlu0 %841, %v415_v12   ;;  %p850_p13 = pneg %p849_p12 }
  0x1c   : > { %754 = vmatmul.mubr.msk.f32.vlgmr.msra.gmra.mrb[0].mxu0 %vm303_vm0, %v276_v7  ;;  %434 = vperm.xlu1 %842, %v416_v13   ;;  %p856_p2 = por %p855_p1, %p854_p0 }
  0x1d   : > { %756 = vmatprep.mubr.msk.f32.mxu0 %vm303_vm0, %v277_v8  ;;  %792 = vmatprep.subr.bf16.mxu0 %v912_v37 }
  0x1e   : > { %p857_p3 = pnand %p856_p2, %p850_p13 }
  0x1f   : > { %543 = vperm.xlu0 %841, %v540_v14  }
  0x20   : > { %757 = vmatmul.mubr.msk.f32.gmra.mrb[2].mxu0 %vm303_vm0, %v278_v11 }
  0x21   : > { %781 = vmatprep.mubr.msk.f32.mxu0 %vm913_vm3, %v914_v38 }
  0x8e   : > { %v286_v16 = vpop.permute.xlu0 %285 }
  0x8f   : > { %v296_v17 = vpop.permute.xlu1 %295 }
  0x92   : > { %v291_v18 = vpop.permute.xlu0 %290 }
  0x93   : > { %v301_v24 = vpop.permute.xlu1 %300 }
  0x96   : > { %v420_v40 = vpop.permute.xlu0 %419 }
  0x97   : > { %v425_v39 = vpop.permute.xlu1 %424 }
  0x9a   : > { %v430_v49 = vpop.permute.xlu0 %429 }
  0x9b   : > { %v435_v46 = vpop.permute.xlu1 %434 }
  0x9e   : > { %v544_v58 = vpop.permute.xlu0 %543 }
  0xef   : > { %v755_v19 = vpop.f32.mrb[0].mxu0 }
  0xf0   : > { %v392_v20 = vadd.f32 %v755_v19, %v291_v18  ;;  %v386_v21 = vpop.f32.mrb[1].mxu0 }
  0xf1   : > { %v387_v22 = vadd.f32 %v386_v21, %v286_v16 }
  0xf2   : > { %v406_v23 = vmax.f32 %v392_v20, 0.0 }
  0xf3   : > { %v405_v25 = vmax.f32 %v387_v22, 0.0  ;;  %v758_v26 = vpop.f32.mrb[2].mxu0 }
  0xf4   : > { %v402_v27 = vadd.f32 %v758_v26, %v301_v24  ;;  %v396_v28 = vpop.f32.mrb[3].mxu0 }
  0xf5   : > { %v397_v29 = vadd.f32 %v396_v28, %v296_v17  ;;  %v784_v30 = vpack.c.bf16 %v406_v23, %v405_v25 }
  0xf6   : > { %v408_v31 = vmax.f32 %v402_v27, 0.0 }
  0xf7   : > { %v407_v32 = vmax.f32 %v397_v29, 0.0  ;;  %785 = vmatprep.subr.bf16.mxu1 %v784_v30 }
  0xf8   : > { %787 = vmatpush3.bf16.msra.mxu1 %v784_v30 }
  0xf9   : > { %v788_v33 = vpack.c.bf16 %v408_v31, %v407_v32 }
  0xfb   : > { %789 = vmatprep.subr.bf16.mxu1 %v788_v33 }
  0xfc   : > { %791 = vmatpush3.bf16.msra.mxu1 %v788_v33 }
  0xff   : > { %768 = vmatmul.mubr.msk.f32.vlgmr.msra.gmra.mrb[0].mxu1 %vm437_vm2, %v410_v34 }
 0x100   : > { %770 = vmatprep.mubr.msk.f32.mxu1 %vm437_vm2, %v411_v35 }
 0x103   : > { %771 = vmatmul.mubr.msk.f32.gmra.mrb[2].mxu1 %vm437_vm2, %v412_v36 }
 0x1d2   : > { %v769_v41 = vpop.f32.mrb[0].mxu1 }
 0x1d3   : > { %v522_v42 = vadd.f32 %v769_v41, %v425_v39  ;;  %v516_v43 = vpop.f32.mrb[1].mxu1 }
 0x1d4   : > { %v517_v44 = vadd.f32 %v516_v43, %v420_v40 }
 0x1d5   : > { %v536_v45 = vmax.f32 %v522_v42, 0.0 }
 0x1d6   : > { %v535_v47 = vmax.f32 %v517_v44, 0.0  ;;  %v772_v48 = vpop.f32.mrb[2].mxu1 }
 0x1d7   : > { %v532_v50 = vadd.f32 %v772_v48, %v435_v46  ;;  %v526_v51 = vpop.f32.mrb[3].mxu1 }
 0x1d8   : > { %v793_v52 = vpack.c.bf16 %v536_v45, %v535_v47  ;;  %v527_v53 = vadd.f32 %v526_v51, %v430_v49 }
 0x1d9   : > { %v538_v54 = vmax.f32 %v532_v50, 0.0 }
 0x1da   : > { %v537_v55 = vmax.f32 %v527_v53, 0.0  ;;  %794 = vmatpush3.bf16.msra.mxu0 %v793_v52 }
 0x1db   : > { %795 = vmatprep.subr.bf16.mxu0 %v912_v37 }
 0x1dc   : > { %v796_v56 = vpack.c.bf16 %v538_v54, %v537_v55 }
 0x1de   : > { %797 = vmatpush3.bf16.msra.mxu0 %v796_v56 }
 0x1e1   : > { %782 = vmatmul.mubr.msk.f32.vlgmr.msra.gmra.mrb[4].mxu0 %vm437_vm2, %v539_v57 }
 0x2b4   : > { %v615_v59 = vpop.f32.mrb[4].mxu0 }
 0x2b5   : > { %v616_v60 = vadd.f32 %v615_v59, %v544_v58  ;;  %v783_v61 = vpop.f32.mrb[5].mxu0 }
 0x2b7   : > { %v620_v62 = vsel %vm619_vm4, %v616_v60, -inf }
 0x2b8   : > { %v621_v63 = vrot.slane %v620_v62, 4 }
 0x2ba   : > { %v622_v0 = vmax.f32 %v620_v62, %v621_v63 }
 0x2bc   : > { %v623_v1 = vrot.slane %v622_v0, 2 }
 0x2be   : > { %v624_v2 = vmax.f32 %v622_v0, %v623_v1 }
 0x2c0   : > { %v625_v3 = vrot.slane %v624_v2, 1 }
 0x2c2   : > { %v626_v4 = vmax.f32 %v624_v2, %v625_v3 }
 0x2c4   : > { %v627_v5 = vsub.f32 %v616_v60, %v626_v4 }
 0x2c6   : > { %v628_v6 = vmul.f32 1.442695, %v627_v5 }
 0x2c8   : > { %843 = vpow2.f32 %v628_v6 }
 0x2d2   : > { %v844_v7 = vpop.eup %843 }
 0x2d3   : > { %v630_v8 = vsel %vm619_vm4, %v844_v7, 0.0 }
 0x2d4   : > { %v631_v9 = vrot.slane %v630_v8, 4 }
 0x2d6   : > { %v632_v10 = vadd.f32 %v631_v9, %v630_v8 }
 0x2d8   : > { %v633_v11 = vrot.slane %v632_v10, 2 }
 0x2da   : > { %v634_v12 = vadd.f32 %v633_v11, %v632_v10 }
 0x2dc   : > { %v635_v13 = vrot.slane %v634_v12, 1 }
 0x2de   : > { %v636_v14 = vadd.f32 %v635_v13, %v634_v12 }
 0x2e0   : > { %845 = vrcp.f32 %v636_v14 }
 0x2ea   : > { %v846_v15 = vpop.eup %845 }
 0x2eb   : > { %v638_v16 = vmul.f32 %v846_v15, %v844_v7 }
 0x2ed   : > { %639 = vst [vmem:[%s269_s15] sm:$0x3] %v638_v16 }
 0x2ee   : > { %860 = shalt.err (!%p857_p3)
}
 0x2ef   : > { %s861_s29 = scalar_lea.hbm %s1077_s19, 32  ;;  %s865_s13 = scalar_lea.hbm %s1126_s7, 64 }
 0x2f0   : > { %p862_p4 = scmp.ne.s32.totalorder %s1077_s19, %s861_s29  ;;  %p866_p9 = scmp.lt.u32.totalorder %s1077_s19, %s1126_s7 }
 0x2f1   : > { %p867_p10 = scmp.lt.u32.totalorder %s865_s13, %s861_s29  ;;  %p869_p12 = scmp.lt.u32.totalorder %s861_s29, %s1077_s19 }
 0x2f2   : > { %p863_p7 = pnand %p862_p4, %p994_p5 }
 0x2f3   : > { %p868_p11 = por %p867_p10, %p866_p9 }
 0x2f4   : > { %p864_p8 = pneg %p863_p7 }
 0x2f5   : > { %p870_p13 = por %p869_p12, %p868_p11 }
 0x2f7   : > { %p871_p0 = pnand %p870_p13, %p864_p8 }
 0x2f9   : > { %874 = shalt.err (!%p871_p0)
}
 0x2fa   : > { %798 = dma.vmem_to_hbm [thread:$0]  (%p994_p5), %s1079_s16, 32, %s1077_s19, %s641_s20  }
 0x2fb PF: > { %p804_p1 = scmp.ge.s32.totalorder %s909_s27, 2  ;;  %s666_s17 = sand.u32 1, %s897_s24  }
 0x2fc   : > { %s667_s18 = scalar_lea.sflag [#allocation3], %s666_s17 }
 0x2fd   : > { %p801_p2 = pnand %p804_p1, %p998_p6 }
 0x2ff   : > { %892 = dma.done.wait (!%p801_p2), %s667_s18, 32  }
 0x300   : > { %894 = vsyncadd (!%p801_p2), %s667_s18, 4294967264  ;;  %p17_p3 = scmp.ge.s32.totalorder %s981_s30, 4   ;;  %s1129_s24 = smov %s901_s25 }
 0x301   : > { %s1130_s25 = smov %s905_s26  ;;  %s1131_s26 = smov %s992_s10 }
 0x302   : > { %s1132_s27 = smov %s981_s30  ;;  %19 = sbr.rel (!%p17_p3) target bundleno = 3 (0x3), region = 83 }
 0x309   :  { %672 = vsyncpa [#allocation3], 1 }
 0x30a   :  { %674 = vsyncpa [#allocation3 + $0x1], 1 }

</bundles_post_ra>
